<compile_context>
chip_gen: v7x
topology: tpu7x:2x2x1
jax: 0.10.0
libtpu: 0.0.40
codegen_flags: <defaults>
</compile_context>

<pallas_src>
import functools

import jax
import jax.numpy as jnp
from jax import lax
from jax.experimental import pallas as pl
from jax.experimental.pallas import tpu as pltpu


_LANE = 128                    # channel dims padded to the TPU lane width
_SUM_TM, _SUM_TK = 512, 512    # MXU (sum) path tile upper bounds
_MAX_TM, _MAX_TK = 128, 512    # VPU (max) path tile upper bounds
_MAX_SUB = 128                 # src sub-chunk for the in-kernel max loop


def _round_up(x, m):
    return ((x + m - 1) // m) * m


def _pick_tile(n, cap, min_tiles=1):
    """Largest tile <= cap that divides n and leaves >= min_tiles tiles."""
    for t in (512, 384, 256, 128):
        if t <= cap and n % t == 0 and n // t >= min_tiles:
            return t
    return 128  # n is always a multiple of 128


# ---------------------------------------------------------------------------
# Pallas kernel: one (dst-tile, src-chunk) grid step of a GINConv layer
# ---------------------------------------------------------------------------
def _gin_layer_kernel(a_ref, xs_ref, xd_ref, w_ref, b_ref, o_ref, acc_ref, *,
                      agg, relu, sub):
    """a_ref  : (tm, tk)   int8  adjacency tile, A[i, j] = 1 iff edge j -> i
       xs_ref : (tk, C)    bf16  source-feature chunk
       xd_ref : (tm, C)    bf16  self features of this dst tile
       w_ref  : (C, Cout)  bf16  linear weight (transposed, (Cin, Cout))
       b_ref  : (1, Cout)  f32   bias
       o_ref  : (tm, Cout)       layer output (bf16 hidden layers / f32 last)
       acc_ref: (tm, C)    f32   VMEM aggregation accumulator (resident over k)
    """
    k = pl.program_id(1)

    @pl.when(k == 0)
    def _init():
        # sum starts at 0; max also starts at 0: inputs are post-ReLU (>= 0) so
        # 0 never exceeds the true max, and zero-in-degree nodes get the
        # DGL-style zero fill for free.
        acc_ref[...] = jnp.zeros(acc_ref.shape, acc_ref.dtype)

    if agg == "sum":
        # native bf16 MXU path, f32 accumulation (0/1 adjacency is bf16-exact)
        a = a_ref[...].astype(jnp.bfloat16)
        acc_ref[...] += jnp.dot(a, xs_ref[...],
                                preferred_element_type=jnp.float32)
    else:
        # running masked max, folded per `sub`-row source sub-chunk.
        # a in {0,1} and x >= 0  =>  max_j where(a,x,-inf) == max_j (a * x),
        # with 0 for isolated nodes.  bf16 mul/max of 0/1 * bf16 is exact.
        # (NOTE: bf16 VALU is native on v6e/v7x; emulated on v5e.)
        def step(s, acc):
            off = pl.multiple_of(s * sub, sub)
            a_sub = a_ref[:, pl.ds(off, sub)].astype(jnp.bfloat16)   # (tm, sub)
            x_sub = xs_ref[pl.ds(off, sub), :]                       # (sub, C)
            prod = a_sub[:, :, None] * x_sub[None, :, :]             # (tm,sub,C)
            return jnp.maximum(acc,
                               jnp.max(prod, axis=1).astype(jnp.float32))

        n_sub = xs_ref.shape[0] // sub
        acc_ref[...] = lax.fori_loop(0, n_sub, step, acc_ref[...], unroll=True)

    @pl.when(k == pl.num_programs(1) - 1)
    def _finalize():
        h = xd_ref[...].astype(jnp.float32) + acc_ref[...]  # (1+eps)*x_i + AGG
        y = jnp.dot(h.astype(jnp.bfloat16), w_ref[...],
                    preferred_element_type=jnp.float32)
        y = y + b_ref[...]
        if relu:
            y = jnp.maximum(y, 0.0)
        o_ref[...] = y.astype(o_ref.dtype)


def gin_conv_layer(a_pad, h_pad, w_pad, b_pad, *, agg, relu, out_dtype):
    """One GINConv layer on padded operands.

    a_pad:(Np,Np) int8, h_pad:(Np,Cp) bf16, w_pad:(Cp,Cop) bf16, b_pad:(1,Cop) f32.
    Np and Cp/Cop are multiples of 128.
    """
    Np = a_pad.shape[0]
    cin_p = h_pad.shape[1]
    cout_p = w_pad.shape[1]

    if agg == "sum":
        # keep >= 2 dst tiles whenever possible so both v7x TCs get work
        tm = _pick_tile(Np, _SUM_TM, min_tiles=2)
        tk = _pick_tile(Np, _SUM_TK)
    else:
        tm = min(_MAX_TM, Np)
        tk = _pick_tile(Np, _MAX_TK)
    sub = min(_MAX_SUB, tk)
    grid = (Np // tm, Np // tk)

    kernel = functools.partial(_gin_layer_kernel, agg=agg, relu=relu, sub=sub)
    return pl.pallas_call(
        kernel,
        out_shape=jax.ShapeDtypeStruct((Np, cout_p), out_dtype),
        grid_spec=pltpu.PrefetchScalarGridSpec(
            num_scalar_prefetch=0,
            grid=grid,
            in_specs=[
                pl.BlockSpec((tm, tk), lambda i, k: (i, k)),          # A tile
                pl.BlockSpec((tk, cin_p), lambda i, k: (k, 0)),       # x src chunk
                pl.BlockSpec((tm, cin_p), lambda i, k: (i, 0)),       # x self
                pl.BlockSpec((cin_p, cout_p), lambda i, k: (0, 0)),   # W
                pl.BlockSpec((1, cout_p), lambda i, k: (0, 0)),       # b
            ],
            out_specs=pl.BlockSpec((tm, cout_p), lambda i, k: (i, 0)),
            scratch_shapes=[pltpu.VMEM((tm, cin_p), jnp.float32)],
        ),
        compiler_params=pltpu.CompilerParams(
            dimension_semantics=("parallel", "arbitrary"),
            vmem_limit_bytes=48 * 1024 * 1024,
        ),
    )(a_pad, h_pad, h_pad, w_pad, b_pad)


# ---------------------------------------------------------------------------
# Model: parameters + forward (mirrors GIN / GIN_sparse, eval mode)
# ---------------------------------------------------------------------------
def init_gin_params(key, in_channels, hidden_channels, out_channels, num_layers):
    dims = [in_channels] + [hidden_channels] * (num_layers - 1) + [out_channels]
    params = []
    for li in range(num_layers):
        kin, kout = dims[li], dims[li + 1]
        key, kw, kb = jax.random.split(key, 3)
        bound = 1.0 / (kin ** 0.5)                  # PyTorch nn.Linear default
        w = jax.random.uniform(kw, (kout, kin), jnp.float32, -bound, bound)
        b = jax.random.uniform(kb, (kout,), jnp.float32, -bound, bound)
        params.append((w.T, b))                     # store transposed (Cin, Cout)
    return params


def gin_forward(x, adj, params):
    """Eval-mode forward of GIN (dropout / dropout_adj are identity)."""
    N, cin = x.shape
    num_layers = len(params)
    cout_final = params[-1][0].shape[1]
    aggs = ["sum"] + ["max"] * (num_layers - 1)

    # adaptive node padding (lane multiple); tiles adapt to whatever divides Np
    Np = _round_up(N, _LANE)
    a_pad = jnp.zeros((Np, Np), jnp.int8).at[:N, :N].set(adj.astype(jnp.int8))

    cp = _round_up(cin, _LANE)
    h = jnp.zeros((Np, cp), jnp.bfloat16).at[:N, :cin].set(
        x.astype(jnp.bfloat16))

    for li, (w_t, b) in enumerate(params):
        c_in, c_out = w_t.shape
        cop = _round_up(c_out, _LANE)
        w_pad = jnp.zeros((cp, cop), jnp.bfloat16).at[:c_in, :c_out].set(
            w_t.astype(jnp.bfloat16))
        b_pad = jnp.zeros((1, cop), jnp.float32).at[0, :c_out].set(b)
        relu = li < num_layers - 1
        out_dtype = jnp.bfloat16 if relu else jnp.float32   # hidden bf16, last f32
        h = gin_conv_layer(a_pad, h, w_pad, b_pad, agg=aggs[li], relu=relu,
                           out_dtype=out_dtype)
        cp = cop

    return h[:N, :cout_final]


# ---------------------------------------------------------------------------
# Pure-JAX references
# ---------------------------------------------------------------------------
def gin_forward_ref(x, adj, params, emulate_bf16=False):
    """Reference forward.  With emulate_bf16=True, mirrors the kernel's bf16
    storage / bf16 MXU-operand rounding (f32 accumulation everywhere)."""
    num_layers = len(params)
    aggs = ["sum"] + ["max"] * (num_layers - 1)

    def rt(v):  # bf16 round-trip when emulating the kernel's dtypes
        return v.astype(jnp.bfloat16).astype(jnp.float32) if emulate_bf16 else v

    adj_f = adj.astype(jnp.float32)
    h = rt(x.astype(jnp.float32))
    for li, (w_t, b) in enumerate(params):
        last = li == num_layers - 1
        if aggs[li] == "sum":
            neigh = adj_f @ h
        else:
            vals = jnp.where(adj_f[:, :, None] > 0, h[None, :, :], -jnp.inf)
            neigh = jnp.max(vals, axis=1)
            neigh = jnp.where(jnp.max(adj_f, axis=1, keepdims=True) > 0,
                              neigh, 0.0)
        pre = rt(h + neigh)
        y = pre @ rt(w_t) + b
        if not last:
            y = jnp.maximum(y, 0.0)
        h = y if last else rt(y)
    return h


if __name__ == "__main__":
    N = 32              # nodes
    in_channels = 16
    hidden_channels = 32
    out_channels = 8
    num_layers = 3

    key = jax.random.PRNGKey(0)
    k_adj, k_x, k_par = jax.random.split(key, 3)

    # deterministic random graph; shifted-eye "ring" guarantees in-degree >= 1
    adj = (jax.random.uniform(k_adj, (N, N)) < 0.15).astype(jnp.float32)
    ring = jnp.roll(jnp.eye(N, dtype=jnp.float32), 1, axis=1)
    adj = jnp.maximum(adj, ring)

    x = jax.random.normal(k_x, (N, in_channels), dtype=jnp.float32)
    params = init_gin_params(k_par, in_channels, hidden_channels, out_channels,
                             num_layers)

    out = jax.block_until_ready(gin_forward(x, adj, params))
    assert out.shape == (N, out_channels)

    # tight check vs a reference that mirrors the kernel's bf16 rounding
    ref_bf16 = gin_forward_ref(x, adj, params, emulate_bf16=True)
    assert jnp.allclose(out, ref_bf16, atol=5e-3, rtol=5e-3), \
        "mismatch vs bf16-emulating reference"

    # semantic sanity check vs the full-f32 reference (loose: bf16 carry)
    ref_f32 = gin_forward_ref(x, adj, params, emulate_bf16=False)
    assert jnp.allclose(out, ref_f32, atol=8e-2, rtol=8e-2), \
        "mismatch vs f32 reference"

    print("KERNEL_OK")
</pallas_src>

<mosaic_0001>
module attributes {stable_mosaic.version = 11 : i64} {
  func.func @_gin_layer_kernel(%arg0: i32, %arg1: i32, %arg2: memref<128x128xi8, #tpu.memory_space<vmem>>, %arg3: memref<128x128xbf16, #tpu.memory_space<vmem>>, %arg4: memref<128x128xbf16, #tpu.memory_space<vmem>>, %arg5: memref<128x128xbf16, #tpu.memory_space<vmem>>, %arg6: memref<1x128xf32, #tpu.memory_space<vmem>>, %arg7: memref<128x128xbf16, #tpu.memory_space<vmem>>, %arg8: memref<128x128xf32, #tpu.memory_space<vmem>>) attributes {dimension_semantics = [#tpu.dimension_semantics<parallel>, #tpu.dimension_semantics<arbitrary>], iteration_bounds = array<i64: 1, 1>, scalar_prefetch = 0 : i64, scratch_operands = 1 : i64, tpu.core_type = #tpu.core_type<tc>, window_params = [{transform_indices = @transform_0, window_bounds = array<i64: 128, 128>}, {transform_indices = @transform_1, window_bounds = array<i64: 128, 128>}, {transform_indices = @transform_2, window_bounds = array<i64: 128, 128>}, {pipeline_mode = #tpu.pipeline_mode<synchronous>, transform_indices = @transform_3, window_bounds = array<i64: 128, 128>}, {pipeline_mode = #tpu.pipeline_mode<synchronous>, transform_indices = @transform_4, window_bounds = array<i64: 1, 128>}, {transform_indices = @transform_5, window_bounds = array<i64: 128, 128>}]} {
    %c0_i32 = arith.constant 0 : i32
    %0 = arith.cmpi eq, %arg1, %c0_i32 : i32
    %1 = arith.extui %0 : i1 to i32
    %c0_i32_0 = arith.constant 0 : i32
    %2 = arith.cmpi ne, %1, %c0_i32_0 : i32
    scf.if %2 {
      %cst_10 = arith.constant 0.000000e+00 : f32
      %13 = vector.broadcast %cst_10 : f32 to vector<128x128xf32>
      %c0_11 = arith.constant 0 : index
      %c0_12 = arith.constant 0 : index
      %14 = vector.load %arg8[%c0_11, %c0_12] : memref<128x128xf32, #tpu.memory_space<vmem>>, vector<128x128xf32>
      tpu.vector_store %arg8[%c0_11, %c0_12], %13 {strides = array<i32>} : memref<128x128xf32, #tpu.memory_space<vmem>>, vector<128x128xf32>,
    } else {
    }
    %c0 = arith.constant 0 : index
    %c0_1 = arith.constant 0 : index
    %3 = vector.load %arg2[%c0, %c0_1] : memref<128x128xi8, #tpu.memory_space<vmem>>, vector<128x128xi8>
    %4 = arith.sitofp %3 : vector<128x128xi8> to vector<128x128xbf16>
    %c0_2 = arith.constant 0 : index
    %c0_3 = arith.constant 0 : index
    %5 = vector.load %arg8[%c0_2, %c0_3] : memref<128x128xf32, #tpu.memory_space<vmem>>, vector<128x128xf32>
    %c0_4 = arith.constant 0 : index
    %c0_5 = arith.constant 0 : index
    %6 = vector.load %arg3[%c0_4, %c0_5] : memref<128x128xbf16, #tpu.memory_space<vmem>>, vector<128x128xbf16>
    %cst = arith.constant dense<0.000000e+00> : vector<128x128xf32>
    %7 = tpu.matmul %4, %6, %cst {dimension_numbers = #tpu.dot_dimension_numbers<[1], [0], [0], [1], [0, 0, 1, 1], [], []>} : vector<128x128xbf16>, vector<128x128xbf16>, vector<128x128xf32> -> vector<128x128xf32>
    %8 = arith.addf %5, %7 : vector<128x128xf32>
    %c0_6 = arith.constant 0 : index
    %c0_7 = arith.constant 0 : index
    %9 = vector.load %arg8[%c0_6, %c0_7] : memref<128x128xf32, #tpu.memory_space<vmem>>, vector<128x128xf32>
    tpu.vector_store %arg8[%c0_6, %c0_7], %8 {strides = array<i32>} : memref<128x128xf32, #tpu.memory_space<vmem>>, vector<128x128xf32>,
    %c0_i32_8 = arith.constant 0 : i32
    %10 = arith.cmpi eq, %arg1, %c0_i32_8 : i32
    %11 = arith.extui %10 : i1 to i32
    %c0_i32_9 = arith.constant 0 : i32
    %12 = arith.cmpi ne, %11, %c0_i32_9 : i32
    scf.if %12 {
      %c0_10 = arith.constant 0 : index
      %c0_11 = arith.constant 0 : index
      %13 = vector.load %arg4[%c0_10, %c0_11] : memref<128x128xbf16, #tpu.memory_space<vmem>>, vector<128x128xbf16>
      %14 = arith.extf %13 : vector<128x128xbf16> to vector<128x128xf32>
      %c0_12 = arith.constant 0 : index
      %c0_13 = arith.constant 0 : index
      %15 = vector.load %arg8[%c0_12, %c0_13] : memref<128x128xf32, #tpu.memory_space<vmem>>, vector<128x128xf32>
      %16 = arith.addf %14, %15 : vector<128x128xf32>
      %17 = arith.truncf %16 : vector<128x128xf32> to vector<128x128xbf16>
      %c0_14 = arith.constant 0 : index
      %c0_15 = arith.constant 0 : index
      %18 = vector.load %arg5[%c0_14, %c0_15] : memref<128x128xbf16, #tpu.memory_space<vmem>>, vector<128x128xbf16>
      %cst_16 = arith.constant dense<0.000000e+00> : vector<128x128xf32>
      %19 = tpu.matmul %17, %18, %cst_16 {dimension_numbers = #tpu.dot_dimension_numbers<[1], [0], [0], [1], [0, 0, 1, 1], [], []>} : vector<128x128xbf16>, vector<128x128xbf16>, vector<128x128xf32> -> vector<128x128xf32>
      %c0_17 = arith.constant 0 : index
      %c0_18 = arith.constant 0 : index
      %20 = vector.load %arg6[%c0_17, %c0_18] : memref<1x128xf32, #tpu.memory_space<vmem>>, vector<1x128xf32>
      %21 = vector.broadcast %20 : vector<1x128xf32> to vector<128x128xf32>
      %22 = arith.addf %19, %21 : vector<128x128xf32>
      %cst_19 = arith.constant 0.000000e+00 : f32
      %23 = vector.broadcast %cst_19 : f32 to vector<128x128xf32>
      %24 = arith.maximumf %22, %23 : vector<128x128xf32>
      %25 = arith.truncf %24 : vector<128x128xf32> to vector<128x128xbf16>
      %c0_20 = arith.constant 0 : index
      %c0_21 = arith.constant 0 : index
      %26 = vector.load %arg7[%c0_20, %c0_21] : memref<128x128xbf16, #tpu.memory_space<vmem>>, vector<128x128xbf16>
      tpu.vector_store %arg7[%c0_20, %c0_21], %25 {strides = array<i32>} : memref<128x128xbf16, #tpu.memory_space<vmem>>, vector<128x128xbf16>,
    } else {
    }
    return
  }
  func.func @transform_0(%arg0: i32, %arg1: i32) -> (i32, i32) {
    %c0_i32 = arith.constant 0 : i32
    return %arg0, %arg1 : i32, i32
  }
  func.func @transform_1(%arg0: i32, %arg1: i32) -> (i32, i32) {
    %c0_i32 = arith.constant 0 : i32
    %c0_i32_0 = arith.constant 0 : i32
    return %arg1, %c0_i32 : i32, i32
  }
  func.func @transform_2(%arg0: i32, %arg1: i32) -> (i32, i32) {
    %c0_i32 = arith.constant 0 : i32
    %c0_i32_0 = arith.constant 0 : i32
    return %arg0, %c0_i32 : i32, i32
  }
  func.func @transform_3(%arg0: i32, %arg1: i32) -> (i32, i32) {
    %c0_i32 = arith.constant 0 : i32
    %c0_i32_0 = arith.constant 0 : i32
    %c0_i32_1 = arith.constant 0 : i32
    return %c0_i32, %c0_i32_0 : i32, i32
  }
  func.func @transform_4(%arg0: i32, %arg1: i32) -> (i32, i32) {
    %c0_i32 = arith.constant 0 : i32
    %c0_i32_0 = arith.constant 0 : i32
    %c0_i32_1 = arith.constant 0 : i32
    return %c0_i32, %c0_i32_0 : i32, i32
  }
  func.func @transform_5(%arg0: i32, %arg1: i32) -> (i32, i32) {
    %c0_i32 = arith.constant 0 : i32
    %c0_i32_0 = arith.constant 0 : i32
    return %arg0, %c0_i32 : i32, i32
  }
}

</mosaic_0001>

<bundles_post_ra>
// kernel: tpu_custom_call.1
= control target key start
LH: loop header
LB: loop body
LE: loop exit
PB: predicated region body
PF: predicated region fallthrough
CT: control target
= control target key end

     0   :  { %10 = vsyncpa [#allocation4], 0  ;;  %s1171_s0 = inlined_call_operand.hbm [shape: s8[128,128], index: 0, kind: input, shape index: {}]   ;;  %s1172_s1 = inlined_call_operand.hbm [shape: bf16[128,128], index: 1, kind: input, shape index: {}]   ;;  %s1173_s2 = inlined_call_operand.hbm [shape: bf16[128,128], index: 2, kind: input, shape index: {}]   ;;  %s1174_s3 = inlined_call_operand.hbm [shape: bf16[128,128], index: 3, kind: input, shape index: {}]   ;;  %s1175_s4 = inlined_call_operand.vmem [shape: f32[1,128], index: 4, kind: input, shape index: {}]   ;;  %s1176_s5 = inlined_call_operand.hbm [shape: bf16[128,128], index: 5, kind: output, shape index: {}]  }
   0x1   :  { %11 = vsyncpa [#allocation7], 0 }
   0x2   :  { %12 = vsyncpa [#allocation10], 0 }
   0x3   :  { %13 = vsyncpa [#allocation5], 0  ;;  %s1050_s18 = smov [#allocation6]   ;;  %s932_s22 = scalar_lea.hbm %s1172_s1, 1024 }
   0x4   :  { %s31_s19 = sshll.u32 %s1050_s18, 4  ;;  %p933_p0 = scmp.ne.s32.totalorder %s1172_s1, %s932_s22  ;;  %s32_s19 = int_to_ptr.vmem [resolvable:$true] %s31_s19 }
   0x5   :  { %p936_p1 = scmp.lt.u32.totalorder %s932_s22, %s1172_s1 }
   0x7   :  { %p938_p2 = pnand %p936_p1, %p933_p0 }
   0x9   :  { %941 = shalt.err (!%p938_p2)
}
   0xa   :  { %s942_s27 = scalar_lea.vmem %s32_s19, 1024  ;;  %p947_p4 = scmp.lt.s32.totalorder %s32_s19, %s32_s19 }
   0xb   :  { %p943_p3 = scmp.ne.s32.totalorder %s32_s19, %s942_s27  ;;  %p948_p5 = scmp.lt.s32.totalorder %s942_s27, %s942_s27 }
   0xd   :  { %p949_p6 = por %p948_p5, %p947_p4 }
   0xf   :  { %p950_p7 = pnand %p949_p6, %p943_p3 }
  0x11   :  { %953 = shalt.err (!%p950_p7)
}
  0x12   :  { %s1051_s28 = smov 64   ;;  %s1052_s29 = smov 4  }
  0x13   :  { %37 = dma.hbm_to_vmem [thread:$0]  %s1172_s1, 1024, %s32_s19, [#allocation7], %s1051_s28, %s1051_s28, %s1052_s29  }
  0x14   :  { %s1053_s7 = smov [#allocation3]   ;;  %s954_s11 = scalar_lea.hbm %s1171_s0, 512 }
  0x15   :  { %s19_s8 = sshll.u32 %s1053_s7, 4  ;;  %p955_p8 = scmp.ne.s32.totalorder %s1171_s0, %s954_s11  ;;  %s20_s8 = int_to_ptr.vmem [resolvable:$true] %s19_s8 }
  0x16   :  { %p958_p9 = scmp.lt.u32.totalorder %s954_s11, %s1171_s0 }
  0x18   :  { %p960_p10 = pnand %p958_p9, %p955_p8 }
  0x1a   :  { %963 = shalt.err (!%p960_p10)
}
  0x1b   :  { %s964_s16 = scalar_lea.vmem %s20_s8, 512  ;;  %p969_p12 = scmp.lt.s32.totalorder %s20_s8, %s20_s8 }
  0x1c   :  { %p965_p11 = scmp.ne.s32.totalorder %s20_s8, %s964_s16  ;;  %p970_p13 = scmp.lt.s32.totalorder %s964_s16, %s964_s16 }
  0x1e   :  { %p971_p0 = por %p970_p13, %p969_p12 }
  0x20   :  { %p972_p1 = pnand %p971_p0, %p965_p11 }
  0x22   :  { %975 = shalt.err (!%p972_p1)
}
  0x23   :  { %s1054_s1 = smov 128   ;;  %s1055_s17 = smov 8  }
  0x24   :  { %25 = dma.hbm_to_vmem [thread:$0]  %s1171_s0, 512, %s20_s8, [#allocation4], %s1054_s1, %s1054_s1, %s1055_s17  }
  0x25   :  { %s1056_s20 = smov [#allocation8]   ;;  %s1057_s22 = smov [#allocation9]  }
  0x26   :  { %s43_s21 = sshll.u32 %s1056_s20, 4  ;;  %s55_s23 = sshll.u32 %s1057_s22, 4  ;;  %s44_s21 = int_to_ptr.vmem [resolvable:$true] %s43_s21  ;;  %s1116_s23 = int_to_ptr.vmem [resolvable:$true] %s55_s23 }
  0x27   :  { %s976_s26 = scalar_lea.hbm %s1173_s2, 1024 }
  0x28   :  { %p977_p2 = scmp.ne.s32.totalorder %s1173_s2, %s976_s26  ;;  %p980_p3 = scmp.lt.u32.totalorder %s976_s26, %s1173_s2 }
  0x2a   :  { %p982_p4 = pnand %p980_p3, %p977_p2 }
  0x2c   :  { %985 = shalt.err (!%p982_p4)
}
  0x2d   :  { %s986_s0 = scalar_lea.vmem %s44_s21, 1024  ;;  %p991_p6 = scmp.lt.s32.totalorder %s44_s21, %s44_s21 }
  0x2e   :  { %p987_p5 = scmp.ne.s32.totalorder %s44_s21, %s986_s0  ;;  %p992_p7 = scmp.lt.s32.totalorder %s986_s0, %s986_s0 }
  0x30   :  { %p993_p8 = por %p992_p7, %p991_p6 }
  0x32   :  { %p994_p9 = pnand %p993_p8, %p987_p5 }
  0x34   :  { %997 = shalt.err (!%p994_p9)
}
  0x35   :  { %49 = dma.hbm_to_vmem [thread:$0]  %s1173_s2, 1024, %s44_s21, [#allocation7], %s1051_s28, %s1051_s28, %s1052_s29  }
  0x36   :  { %s998_s12 = scalar_lea.hbm %s1174_s3, 1024 }
  0x37   :  { %p999_p10 = scmp.ne.s32.totalorder %s1174_s3, %s998_s12  ;;  %p1002_p11 = scmp.lt.u32.totalorder %s998_s12, %s1174_s3 }
  0x39   :  { %p1004_p12 = pnand %p1002_p11, %p999_p10 }
  0x3b   :  { %1007 = shalt.err (!%p1004_p12)
}
  0x3c   :  { %s1008_s1 = scalar_lea.vmem %s1116_s23, 1024  ;;  %p1013_p0 = scmp.lt.s32.totalorder %s1116_s23, %s1116_s23 }
  0x3d   :  { %p1009_p13 = scmp.ne.s32.totalorder %s1116_s23, %s1008_s1  ;;  %p1014_p1 = scmp.lt.s32.totalorder %s1008_s1, %s1008_s1 }
  0x3f   :  { %p1015_p2 = por %p1014_p1, %p1013_p0 }
  0x41   :  { %p1016_p3 = pnand %p1015_p2, %p1009_p13 }
  0x43   :  { %1019 = shalt.err (!%p1016_p3)
}
  0x44   :  { %61 = dma.hbm_to_vmem [thread:$0]  %s1174_s3, 1024, %s1116_s23, [#allocation10], %s1051_s28, %s1051_s28, %s1052_s29  }
  0x45   :  { %1042 = dma.done.wait [#allocation4], 512  }
  0x46   :  { %1043 = vsyncadd [#allocation4], 4294966784 }
  0x47   :  { %1044 = dma.done.wait [#allocation7], 2048  }
  0x48   :  { %1045 = vsyncadd [#allocation7], 4294965248 }
  0x49   :  { %1046 = dma.done.wait [#allocation10], 1024  }
  0x4a   :  { %1047 = vsyncadd [#allocation10], 4294966272  ;;  %v916_v0 = vld [vmem:[#allocation6] sm:$0xff]   ;;  %v917_v1 = vld [vmem:[#allocation6 + $0x8] sm:$0xff]  }
  0x4b   :  { %843 = vmatprep.subr.bf16.mxu0 %v916_v0  ;;  %v918_v2 = vld [vmem:[#allocation6 + $0x10] sm:$0xff]   ;;  %v919_v3 = vld [vmem:[#allocation6 + $0x18] sm:$0xff]   ;;  %v97_v4 = vld [vmem:[#allocation3] sm:$0xff] }
  0x4c   :  { %844 = vmatpush3.bf16.msra.mxu0 %v916_v0  ;;  %v101_v5 = vunpack.c.l.s8.bf16 %v97_v4  ;;  %v924_v6 = vld [vmem:[#allocation9] sm:$0xff]   ;;  %v925_v7 = vld [vmem:[#allocation9 + $0x8] sm:$0xff]   ;;  %v926_v9 = vld [vmem:[#allocation9 + $0x10] sm:$0xff]   ;;  %v102_v17 = vunpack.c.h.s8.bf16 %v97_v4 }
  0x4d   :  { %845 = vmatprep.subr.bf16.mxu0 %v917_v1  ;;  %v920_v8 = vld [vmem:[#allocation6 + $0x20] sm:$0xff]   ;;  %875 = vmatprep.subr.bf16.mxu1 %v924_v6  ;;  %v921_v10 = vld [vmem:[#allocation6 + $0x28] sm:$0xff]   ;;  %v927_v11 = vld [vmem:[#allocation9 + $0x18] sm:$0xff]  }
  0x4e   :  { %859 = vmatprep.mubr.bf16.mxu0 %v101_v5  ;;  %876 = vmatpush3.bf16.msra.mxu1 %v924_v6  ;;  %v922_v12 = vld [vmem:[#allocation6 + $0x30] sm:$0xff]   ;;  %v928_v13 = vld [vmem:[#allocation9 + $0x20] sm:$0xff]   ;;  %v923_v14 = vld [vmem:[#allocation6 + $0x38] sm:$0xff]  }
  0x4f   :  { %877 = vmatprep.subr.bf16.mxu1 %v925_v7  ;;  %v929_v15 = vld [vmem:[#allocation9 + $0x28] sm:$0xff]   ;;  %v99_v19 = vld [vmem:[#allocation3 + $0x10] sm:$0xff]  ;;  %v100_v22 = vld [vmem:[#allocation3 + $0x18] sm:$0xff] }
  0x50   :  { %846 = vmatpush3.bf16.msra.mxu0 %v917_v1  ;;  %v98_v16 = vld [vmem:[#allocation3 + $0x8] sm:$0xff]  ;;  %v105_v21 = vunpack.c.l.s8.bf16 %v99_v19  ;;  %v106_v23 = vunpack.c.h.s8.bf16 %v99_v19  ;;  %v107_v24 = vunpack.c.l.s8.bf16 %v100_v22  ;;  %v108_v25 = vunpack.c.h.s8.bf16 %v100_v22  ;;  %v930_v26 = vld [vmem:[#allocation9 + $0x30] sm:$0xff]   ;;  %v931_v27 = vld [vmem:[#allocation9 + $0x38] sm:$0xff]  }
  0x51   :  { %847 = vmatprep.subr.bf16.mxu0 %v918_v2  ;;  %v103_v18 = vunpack.c.l.s8.bf16 %v98_v16  ;;  %v104_v20 = vunpack.c.h.s8.bf16 %v98_v16  ;;  %v797_v28 = vld [vmem:[#allocation8 + $0x8] sm:$0xff]   ;;  %v726_v29 = vld [vmem:[#allocation8] sm:$0xff]   ;;  %v799_v42 = vld [vmem:[#allocation8 + $0x18] sm:$0xff]  }
  0x52   :  { %878 = vmatpush3.bf16.msra.mxu1 %v925_v7  ;;  %v731_v30 = vunpack.c.l.bf16 %v797_v28  ;;  %v732_v31 = vunpack.c.h.bf16 %v797_v28  ;;  %v727_v33 = vunpack.c.l.bf16 %v726_v29  ;;  %v728_v34 = vunpack.c.h.bf16 %v726_v29  ;;  %v798_v44 = vld [vmem:[#allocation8 + $0x10] sm:$0xff]   ;;  %v801_v58 = vld [vmem:[#allocation8 + $0x28] sm:$0xff]   ;;  %v800_v60 = vld [vmem:[#allocation8 + $0x20] sm:$0xff]  }
  0x53   :  { %879 = vmatprep.subr.bf16.mxu1 %v926_v9  ;;  %v739_v46 = vunpack.c.l.bf16 %v799_v42  ;;  %v740_v47 = vunpack.c.h.bf16 %v799_v42  ;;  %v735_v49 = vunpack.c.l.bf16 %v798_v44  ;;  %v736_v50 = vunpack.c.h.bf16 %v798_v44  ;;  %v684_v28 = vld [vmem:[%s1175_s4] ss:$0 sm:$0xff]  ;;  %s1058_s4 = smov [#allocation11]  }
  0x54   :  { %848 = vmatpush3.bf16.msra.mxu0 %v918_v2  ;;  %v747_v62 = vunpack.c.l.bf16 %v801_v58  ;;  %v748_v63 = vunpack.c.h.bf16 %v801_v58  ;;  %v743_v1 = vunpack.c.l.bf16 %v800_v60  ;;  %v744_v2 = vunpack.c.h.bf16 %v800_v60  ;;  %s662_s19 = sshll.u32 %s1058_s4, 4  ;;  %s663_s19 = int_to_ptr.vmem [resolvable:$true] %s662_s19 }
  0x55   :  { %849 = vmatprep.subr.bf16.mxu0 %v919_v3  ;;  %s1020_s20 = scalar_lea.vmem %s663_s19, 1024  ;;  %p1025_p5 = scmp.lt.s32.totalorder %s663_s19, %s663_s19 }
  0x56   :  { %880 = vmatpush3.bf16.msra.mxu1 %v926_v9  ;;  %p1021_p4 = scmp.ne.s32.totalorder %s663_s19, %s1020_s20  ;;  %p1026_p6 = scmp.lt.s32.totalorder %s1020_s20, %s1020_s20 }
  0x57   :  { %881 = vmatprep.subr.bf16.mxu1 %v927_v11 }
  0x58   :  { %850 = vmatpush3.bf16.msra.mxu0 %v919_v3  ;;  %p1027_p7 = por %p1026_p6, %p1025_p5 }
  0x59   :  { %851 = vmatprep.subr.bf16.mxu0 %v920_v8 }
  0x5a   :  { %882 = vmatpush3.bf16.msra.mxu1 %v927_v11  ;;  %p1028_p8 = pnand %p1027_p7, %p1021_p4 }
  0x5b   :  { %883 = vmatprep.subr.bf16.mxu1 %v928_v13 }
  0x5c   :  { %852 = vmatpush3.bf16.msra.mxu0 %v920_v8 }
  0x5d   :  { %853 = vmatprep.subr.bf16.mxu0 %v921_v10 }
  0x5e   :  { %884 = vmatpush3.bf16.msra.mxu1 %v928_v13 }
  0x5f   :  { %885 = vmatprep.subr.bf16.mxu1 %v929_v15 }
  0x60   :  { %854 = vmatpush3.bf16.msra.mxu0 %v921_v10  ;;  %v803_v10 = vld [vmem:[#allocation8 + $0x38] sm:$0xff]  }
  0x61   :  { %855 = vmatprep.subr.bf16.mxu0 %v922_v12 }
  0x62   :  { %886 = vmatpush3.bf16.msra.mxu1 %v929_v15  ;;  %v756_v15 = vunpack.c.h.bf16 %v803_v10 }
  0x63   :  { %887 = vmatprep.subr.bf16.mxu1 %v930_v26 }
  0x64   :  { %856 = vmatpush3.bf16.msra.mxu0 %v922_v12  ;;  %v802_v12 = vld [vmem:[#allocation8 + $0x30] sm:$0xff]  }
  0x65   :  { %857 = vmatprep.subr.bf16.mxu0 %v923_v14 }
  0x66   :  { %888 = vmatpush3.bf16.msra.mxu1 %v930_v26 }
  0x67   :  { %889 = vmatprep.subr.bf16.mxu1 %v931_v27 }
  0x68   :  { %858 = vmatpush3.bf16.msra.mxu0 %v923_v14  ;;  %v755_v14 = vunpack.c.l.bf16 %v803_v10 }
  0x6a   :  { %890 = vmatpush3.bf16.msra.mxu1 %v931_v27 }
  0x6b   :  { %860 = vmatmul.mubr.bf16.vlgmr.msra.gmra.mrb[0].mxu0 %v102_v17  ;;  %v751_v17 = vunpack.c.l.bf16 %v802_v12 }
  0x6c   :  { %863 = vmatprep.mubr.bf16.mxu0 %v103_v18  ;;  %v752_v18 = vunpack.c.h.bf16 %v802_v12 }
  0x73   :  { %864 = vmatmul.mubr.bf16.gmra.mrb[4].mxu0 %v104_v20 }
  0x74   :  { %867 = vmatprep.mubr.bf16.mxu0 %v105_v21 }
  0x7b   :  { %868 = vmatmul.mubr.bf16.gmra.mrb[8].mxu0 %v106_v23 }
  0x7c   :  { %871 = vmatprep.mubr.bf16.mxu0 %v107_v24 }
  0x83   :  { %872 = vmatmul.mubr.bf16.gmra.mrb[12].mxu0 %v108_v25 }
 0x13e   :  { %v861_v32 = vpop.f32.mrb[0].mxu0 }
 0x13f   :  { %v223_v35 = vpop.f32.mrb[1].mxu0  ;;  %v371_v37 = vadd.f32 %v861_v32, %v731_v30 }
 0x140   :  { %v862_v36 = vpop.f32.mrb[2].mxu0  ;;  %v369_v40 = vadd.f32 %v727_v33, %v223_v35 }
 0x141   :  { %v372_v38 = vadd.f32 %v862_v36, %v732_v31  ;;  %v226_v39 = vpop.f32.mrb[3].mxu0 }
 0x142   :  { %v370_v41 = vadd.f32 %v728_v34, %v226_v39 }
 0x143   :  { %v386_v43 = vpack.c.bf16 %v372_v38, %v371_v37 }
 0x144   :  { %v385_v45 = vpack.c.bf16 %v370_v41, %v369_v40 }
 0x146   :  { %v865_v48 = vpop.f32.mrb[4].mxu0  ;;  %891 = vmatprep.mubr.bf16.mxu1 %v385_v45 }
 0x147   :  { %v239_v51 = vpop.f32.mrb[5].mxu0  ;;  %892 = vmatmul.mubr.bf16.vlgmr.msra.gmra.mrb[0].mxu1 %v386_v43  ;;  %v375_v53 = vadd.f32 %v865_v48, %v739_v46 }
 0x148   :  { %v866_v52 = vpop.f32.mrb[6].mxu0  ;;  %v373_v56 = vadd.f32 %v735_v49, %v239_v51 }
 0x149   :  { %v376_v54 = vadd.f32 %v866_v52, %v740_v47  ;;  %v242_v55 = vpop.f32.mrb[7].mxu0 }
 0x14a   :  { %v374_v57 = vadd.f32 %v736_v50, %v242_v55 }
 0x14b   :  { %v388_v59 = vpack.c.bf16 %v376_v54, %v375_v53 }
 0x14c   :  { %v387_v61 = vpack.c.bf16 %v374_v57, %v373_v56 }
 0x14e   :  { %v869_v0 = vpop.f32.mrb[8].mxu0  ;;  %895 = vmatprep.mubr.bf16.mxu1 %v387_v61 }
 0x14f   :  { %v255_v3 = vpop.f32.mrb[9].mxu0  ;;  %896 = vmatmul.mubr.bf16.gmra.mrb[4].mxu1 %v388_v59  ;;  %v379_v5 = vadd.f32 %v869_v0, %v747_v62 }
 0x150   :  { %v870_v4 = vpop.f32.mrb[10].mxu0  ;;  %v377_v8 = vadd.f32 %v743_v1, %v255_v3 }
 0x151   :  { %v380_v6 = vadd.f32 %v870_v4, %v748_v63  ;;  %v258_v7 = vpop.f32.mrb[11].mxu0 }
 0x152   :  { %v378_v9 = vadd.f32 %v744_v2, %v258_v7 }
 0x153   :  { %v390_v11 = vpack.c.bf16 %v380_v6, %v379_v5 }
 0x154   :  { %v389_v13 = vpack.c.bf16 %v378_v9, %v377_v8 }
 0x156   :  { %v873_v16 = vpop.f32.mrb[12].mxu0  ;;  %899 = vmatprep.mubr.bf16.mxu1 %v389_v13 }
 0x157   :  { %v271_v19 = vpop.f32.mrb[13].mxu0  ;;  %900 = vmatmul.mubr.bf16.gmra.mrb[8].mxu1 %v390_v11  ;;  %v383_v21 = vadd.f32 %v873_v16, %v755_v14 }
 0x158   :  { %v874_v20 = vpop.f32.mrb[14].mxu0  ;;  %v381_v24 = vadd.f32 %v751_v17, %v271_v19 }
 0x159   :  { %v384_v22 = vadd.f32 %v874_v20, %v756_v15  ;;  %v274_v23 = vpop.f32.mrb[15].mxu0 }
 0x15a   :  { %v382_v25 = vadd.f32 %v752_v18, %v274_v23 }
 0x15b   :  { %v392_v26 = vpack.c.bf16 %v384_v22, %v383_v21 }
 0x15c   :  { %v391_v27 = vpack.c.bf16 %v382_v25, %v381_v24 }
 0x15e   :  { %903 = vmatprep.mubr.bf16.mxu1 %v391_v27 }
 0x15f   :  { %904 = vmatmul.mubr.bf16.gmra.mrb[12].mxu1 %v392_v26 }
 0x21a   :  { %v893_v29 = vpop.f32.mrb[0].mxu1 }
 0x21b   :  { %v507_v30 = vadd.f32 %v893_v29, %v684_v28  ;;  %v498_v31 = vpop.f32.mrb[1].mxu1 }
 0x21c   :  { %v499_v32 = vadd.f32 %v684_v28, %v498_v31  ;;  %v894_v33 = vpop.f32.mrb[2].mxu1 }
 0x21d   :  { %v510_v34 = vadd.f32 %v894_v33, %v684_v28  ;;  %v501_v35 = vpop.f32.mrb[3].mxu1  ;;  %v563_v37 = vmax.f32 %v507_v30, 0.0 }
 0x21e   :  { %v502_v36 = vadd.f32 %v684_v28, %v501_v35  ;;  %v561_v39 = vmax.f32 %v499_v32, 0.0 }
 0x21f   :  { %v564_v38 = vmax.f32 %v510_v34, 0.0 }
 0x220   :  { %v562_v40 = vmax.f32 %v502_v36, 0.0 }
 0x221   :  { %v765_v41 = vpack.c.bf16 %v564_v38, %v563_v37 }
 0x222   :  { %v760_v42 = vpack.c.bf16 %v562_v40, %v561_v39  ;;  %v897_v43 = vpop.f32.mrb[4].mxu1 }
 0x223   :  { %804 = vst [vmem:[#allocation11 + $0x8] sm:$0xff] %v765_v41   ;;  %v523_v44 = vadd.f32 %v897_v43, %v684_v28  ;;  %v514_v45 = vpop.f32.mrb[5].mxu1 }
 0x224   :  { %761 = vst [vmem:[#allocation11] sm:$0xff] %v760_v42   ;;  %v515_v46 = vadd.f32 %v684_v28, %v514_v45  ;;  %v898_v47 = vpop.f32.mrb[6].mxu1 }
 0x225   :  { %v526_v48 = vadd.f32 %v898_v47, %v684_v28  ;;  %v517_v49 = vpop.f32.mrb[7].mxu1  ;;  %v567_v51 = vmax.f32 %v523_v44, 0.0 }
 0x226   :  { %v518_v50 = vadd.f32 %v684_v28, %v517_v49  ;;  %v565_v53 = vmax.f32 %v515_v46, 0.0 }
 0x227   :  { %v568_v52 = vmax.f32 %v526_v48, 0.0 }
 0x228   :  { %v566_v54 = vmax.f32 %v518_v50, 0.0 }
 0x229   :  { %v775_v55 = vpack.c.bf16 %v568_v52, %v567_v51 }
 0x22a   :  { %v770_v56 = vpack.c.bf16 %v566_v54, %v565_v53  ;;  %v901_v57 = vpop.f32.mrb[8].mxu1 }
 0x22b   :  { %806 = vst [vmem:[#allocation11 + $0x18] sm:$0xff] %v775_v55   ;;  %v539_v58 = vadd.f32 %v901_v57, %v684_v28  ;;  %v530_v59 = vpop.f32.mrb[9].mxu1 }
 0x22c   :  { %805 = vst [vmem:[#allocation11 + $0x10] sm:$0xff] %v770_v56   ;;  %v531_v60 = vadd.f32 %v684_v28, %v530_v59  ;;  %v902_v61 = vpop.f32.mrb[10].mxu1 }
 0x22d   :  { %v542_v62 = vadd.f32 %v902_v61, %v684_v28  ;;  %v533_v63 = vpop.f32.mrb[11].mxu1  ;;  %v571_v1 = vmax.f32 %v539_v58, 0.0 }
 0x22e   :  { %v534_v0 = vadd.f32 %v684_v28, %v533_v63  ;;  %v569_v3 = vmax.f32 %v531_v60, 0.0 }
 0x22f   :  { %v572_v2 = vmax.f32 %v542_v62, 0.0 }
 0x230   :  { %v570_v4 = vmax.f32 %v534_v0, 0.0 }
 0x231   :  { %v785_v5 = vpack.c.bf16 %v572_v2, %v571_v1 }
 0x232   :  { %v780_v6 = vpack.c.bf16 %v570_v4, %v569_v3  ;;  %v905_v7 = vpop.f32.mrb[12].mxu1 }
 0x233   :  { %808 = vst [vmem:[#allocation11 + $0x28] sm:$0xff] %v785_v5   ;;  %v555_v8 = vadd.f32 %v905_v7, %v684_v28  ;;  %v546_v9 = vpop.f32.mrb[13].mxu1 }
 0x234   :  { %807 = vst [vmem:[#allocation11 + $0x20] sm:$0xff] %v780_v6   ;;  %v547_v10 = vadd.f32 %v684_v28, %v546_v9  ;;  %v906_v11 = vpop.f32.mrb[14].mxu1 }
 0x235   :  { %v558_v12 = vadd.f32 %v906_v11, %v684_v28  ;;  %v549_v13 = vpop.f32.mrb[15].mxu1  ;;  %v575_v15 = vmax.f32 %v555_v8, 0.0 }
 0x236   :  { %v550_v14 = vadd.f32 %v684_v28, %v549_v13  ;;  %v573_v17 = vmax.f32 %v547_v10, 0.0 }
 0x237   :  { %v576_v16 = vmax.f32 %v558_v12, 0.0 }
 0x238   :  { %v574_v18 = vmax.f32 %v550_v14, 0.0 }
 0x239   :  { %v795_v19 = vpack.c.bf16 %v576_v16, %v575_v15 }
 0x23a   :  { %v790_v20 = vpack.c.bf16 %v574_v18, %v573_v17 }
 0x23b   :  { %810 = vst [vmem:[#allocation11 + $0x38] sm:$0xff] %v795_v19  }
 0x23c   :  { %809 = vst [vmem:[#allocation11 + $0x30] sm:$0xff] %v790_v20  }
 0x23d   :  { %1031 = shalt.err (!%p1028_p8)
}
 0x23e   :  { %s1032_s23 = scalar_lea.hbm %s1176_s5, 1024 }
 0x23f   :  { %p1033_p9 = scmp.ne.s32.totalorder %s1176_s5, %s1032_s23  ;;  %p1036_p10 = scmp.lt.u32.totalorder %s1032_s23, %s1176_s5 }
 0x241   :  { %p1038_p11 = pnand %p1036_p10, %p1033_p9 }
 0x243   :  { %1041 = shalt.err (!%p1038_p11)
}
 0x244   :  { %668 = dma.vmem_to_hbm [thread:$0]  %s663_s19, 1024, %s1176_s5, [#allocation5], %s1051_s28, %s1051_s28, %s1052_s29  }
 0x245   :  { %1048 = dma.done.wait [#allocation5], 1024  }
 0x246   :  { %1049 = vsyncadd [#allocation5], 4294966272 }
 0x247   :  { %672 = vsyncpa [#allocation4], 1 }
 0x248   :  { %673 = vsyncpa [#allocation7], 1 }
 0x249   :  { %674 = vsyncpa [#allocation10], 1 }
 0x24a   :  { %675 = vsyncpa [#allocation5], 1 }

</bundles_post_ra>
